<compile_context>
chip_gen: v6e
topology: v6e:2x2x1
jax: 0.10.0
libtpu: 0.0.40
codegen_flags: <defaults>
</compile_context>

<pallas_src>
import functools

import jax
import jax.numpy as jnp
from jax.experimental import pallas as pl
from jax.experimental.pallas import tpu as pltpu


def _round_up(x: int, m: int) -> int:
    return ((x + m - 1) // m) * m


def residual_ffn_kernel(x_ref, w1_ref, b1_ref, w2_ref, b2_ref, o_ref, acc_ref):
    # Grid = (row tiles, d_ff tiles).  x_ref: (tm, dm_p), w1_ref: (dm_p, tf),
    # b1_ref: (1, tf), w2_ref: (tf, dm_p), b2_ref: (1, dm_p), o_ref: (tm, dm_p),
    # acc_ref: (tm, dm_p) f32 scratch accumulator.
    k = pl.program_id(1)

    @pl.when(k == 0)
    def _():
        acc_ref[...] = jnp.zeros_like(acc_ref)

    x = x_ref[...]

    # Linear1 chunk (MXU, f32 accumulation) + bias + ReLU for this d_ff slab.
    z = jnp.dot(x.astype(w1_ref.dtype), w1_ref[...],
                preferred_element_type=jnp.float32)
    z = jnp.maximum(z + b1_ref[...], 0.0)

    # Linear2 partial product accumulated into the f32 scratch accumulator.
    acc_ref[...] += jnp.dot(z.astype(w2_ref.dtype), w2_ref[...],
                            preferred_element_type=jnp.float32)

    @pl.when(k == pl.num_programs(1) - 1)
    def _():
        y = acc_ref[...] + b2_ref[...] + x.astype(jnp.float32)
        o_ref[...] = y.astype(o_ref.dtype)


def prepare_ffn_params(w1, b1, w2, b2, *, tile_ff: int = 512,
                       compute_dtype=jnp.bfloat16):
    """One-time parameter prep (hoisted out of the per-call hot path).

    Pads lane dims to multiples of 128 (d_ff additionally to a multiple of the
    ff tile so there are no partial weight blocks), and casts the weights to the
    matmul compute dtype.  Zero padding is mathematically inert.

    w1: (d_model, d_ff), b1: (d_ff,), w2: (d_ff, d_model), b2: (d_model,)
    (weights stored (in, out), i.e. already transposed vs torch's Linear.weight).
    """
    assert tile_ff % 128 == 0, "tile_ff must be a multiple of 128"
    d_model, d_ff = w1.shape
    dm_p = _round_up(d_model, 128)
    tf = min(tile_ff, _round_up(d_ff, 128))
    df_p = _round_up(d_ff, tf)

    w1p = jnp.pad(w1.astype(compute_dtype),
                  ((0, dm_p - d_model), (0, df_p - d_ff)))
    b1p = jnp.pad(b1.astype(jnp.float32), ((0, df_p - d_ff),)).reshape(1, df_p)
    w2p = jnp.pad(w2.astype(compute_dtype),
                  ((0, df_p - d_ff), (0, dm_p - d_model)))
    b2p = jnp.pad(b2.astype(jnp.float32), ((0, dm_p - d_model),)).reshape(1, dm_p)
    return w1p, b1p, w2p, b2p


def residual_ffn(x, w1p, b1p, w2p, b2p, *, tile_m: int = 256, tile_ff: int = 512):
    """x: (batch, seq, d_model). Returns x + Linear2(ReLU(Linear1(x))).

    w1p/b1p/w2p/b2p come from prepare_ffn_params (pre-padded, pre-cast).
    """
    batch, seq, d_model = x.shape
    dm_p, df_p = w1p.shape
    m = batch * seq

    x2d = x.reshape(m, d_model)
    if dm_p != d_model:
        x2d = jnp.pad(x2d, ((0, 0), (0, dm_p - d_model)))

    # --- ff tiling (must evenly divide the padded d_ff) ---
    tf = min(tile_ff, df_p)
    while df_p % tf:
        tf -= 128
    grid_ff = df_p // tf

    # --- row tiling ---
    tm = min(tile_m, m)
    if tm < m:
        tm = max(8, (tm // 8) * 8)  # keep sublane (8) alignment when tiling
    grid_m = pl.cdiv(m, tm)

    x_itemsize = x2d.dtype.itemsize
    w_itemsize = w1p.dtype.itemsize

    # Advisory cost estimate for XLA's scheduler (two matmuls, 2*M*K*N each).
    flops = 4 * m * dm_p * df_p
    bytes_accessed = (
        m * dm_p * x_itemsize                    # x
        + grid_m * dm_p * df_p * w_itemsize      # w1 (re-read per row tile)
        + grid_m * df_p * dm_p * w_itemsize      # w2
        + df_p * 4 + dm_p * 4                    # biases
        + m * dm_p * x_itemsize                  # out
    )
    cost = pl.CostEstimate(flops=flops, transcendentals=0,
                           bytes_accessed=bytes_accessed)

    # VMEM budget: every pipelined input/output gets 2 buffers; add scratch
    # accumulator and the per-step (tm, tf) temporaries.
    buf = 2
    vmem_est = int(1.15 * (
        buf * tm * dm_p * x_itemsize                     # x tiles
        + buf * tm * dm_p * x_itemsize                   # out tiles
        + buf * (dm_p * tf + tf * dm_p) * w_itemsize     # w1/w2 blocks
        + buf * (tf + dm_p) * 4                          # bias blocks
        + tm * dm_p * 4                                  # f32 accumulator scratch
        + tm * tf * 4 + tm * tf * w_itemsize             # z (f32) + cast for dot2
    ))

    compiler_kwargs = dict(dimension_semantics=("parallel", "arbitrary"))
    try:
        phys_vmem = int(pltpu.get_tpu_info().vmem_capacity_bytes)
    except Exception:
        phys_vmem = 64 * 1024 * 1024  # conservative (v7x per-TC)
    vmem_cap = max(24 * 1024 * 1024, phys_vmem - 8 * 1024 * 1024)
    if vmem_est > 32 * 1024 * 1024:
        compiler_kwargs["vmem_limit_bytes"] = int(min(vmem_est, vmem_cap))

    out2d = pl.pallas_call(
        residual_ffn_kernel,
        out_shape=jax.ShapeDtypeStruct((m, dm_p), x.dtype),
        grid_spec=pltpu.PrefetchScalarGridSpec(
            num_scalar_prefetch=0,
            grid=(grid_m, grid_ff),
            in_specs=[
                pl.BlockSpec((tm, dm_p), lambda i, k: (i, 0)),   # x tile
                pl.BlockSpec((dm_p, tf), lambda i, k: (0, k)),   # w1 slab
                pl.BlockSpec((1, tf), lambda i, k: (0, k)),      # b1 slab
                pl.BlockSpec((tf, dm_p), lambda i, k: (k, 0)),   # w2 slab
                pl.BlockSpec((1, dm_p), lambda i, k: (0, 0)),    # b2
            ],
            out_specs=pl.BlockSpec((tm, dm_p), lambda i, k: (i, 0)),
            scratch_shapes=[pltpu.VMEM((tm, dm_p), jnp.float32)],
        ),
        compiler_params=pltpu.CompilerParams(**compiler_kwargs),
        cost_estimate=cost,
    )(x2d, w1p, b1p, w2p, b2p)

    if dm_p != d_model:
        out2d = out2d[:, :d_model]
    return out2d.reshape(batch, seq, d_model)


if __name__ == "__main__":
    # Small shapes consistent with the module's forward pass.
    batch, seq, d_model, d_ff = 2, 8, 32, 64

    key = jax.random.PRNGKey(0)
    kx, kw1, kb1, kw2, kb2 = jax.random.split(key, 5)

    x = jax.random.normal(kx, (batch, seq, d_model), dtype=jnp.float32)
    # nn.Linear(d_model, d_ff) / nn.Linear(d_ff, d_model) params, stored (in, out).
    w1 = jax.random.normal(kw1, (d_model, d_ff), dtype=jnp.float32) * 0.05
    b1 = jax.random.normal(kb1, (d_ff,), dtype=jnp.float32) * 0.05
    w2 = jax.random.normal(kw2, (d_ff, d_model), dtype=jnp.float32) * 0.05
    b2 = jax.random.normal(kb2, (d_model,), dtype=jnp.float32) * 0.05

    ref = x + (jnp.maximum(x @ w1 + b1, 0.0) @ w2 + b2)

    ffn = jax.jit(functools.partial(residual_ffn, tile_m=256, tile_ff=512))

    # Full-precision path: tight tolerance vs pure-JAX reference.
    params_f32 = prepare_ffn_params(w1, b1, w2, b2, tile_ff=512,
                                    compute_dtype=jnp.float32)
    out = jax.block_until_ready(ffn(x, *params_f32))
    assert out.shape == x.shape
    assert jnp.allclose(out, ref, atol=1e-5, rtol=1e-5), "f32 mismatch vs reference"

    # Default mixed-precision path (bf16 matmul operands, f32 accumulation).
    params_bf16 = prepare_ffn_params(w1, b1, w2, b2, tile_ff=512)
    out_bf16 = jax.block_until_ready(ffn(x, *params_bf16))
    assert jnp.allclose(out_bf16, ref, atol=5e-2, rtol=5e-2), "bf16 mismatch vs reference"

    print("KERNEL_OK")
</pallas_src>

<mosaic_0001>
module attributes {stable_mosaic.version = 11 : i64} {
  func.func @residual_ffn_kernel(%arg0: i32, %arg1: i32, %arg2: memref<16x128xf32, #tpu.memory_space<vmem>>, %arg3: memref<128x128xf32, #tpu.memory_space<vmem>>, %arg4: memref<1x128xf32, #tpu.memory_space<vmem>>, %arg5: memref<128x128xf32, #tpu.memory_space<vmem>>, %arg6: memref<1x128xf32, #tpu.memory_space<vmem>>, %arg7: memref<16x128xf32, #tpu.memory_space<vmem>>, %arg8: memref<16x128xf32, #tpu.memory_space<vmem>>) attributes {dimension_semantics = [#tpu.dimension_semantics<parallel>, #tpu.dimension_semantics<arbitrary>], iteration_bounds = array<i64: 1, 1>, scalar_prefetch = 0 : i64, scratch_operands = 1 : i64, tpu.core_type = #tpu.core_type<tc>, window_params = [{transform_indices = @transform_0, window_bounds = array<i64: 16, 128>}, {transform_indices = @transform_1, window_bounds = array<i64: 128, 128>}, {transform_indices = @transform_2, window_bounds = array<i64: 1, 128>}, {transform_indices = @transform_3, window_bounds = array<i64: 128, 128>}, {pipeline_mode = #tpu.pipeline_mode<synchronous>, transform_indices = @transform_4, window_bounds = array<i64: 1, 128>}, {transform_indices = @transform_5, window_bounds = array<i64: 16, 128>}]} {
    %c0_i32 = arith.constant 0 : i32
    %0 = arith.cmpi eq, %arg1, %c0_i32 : i32
    %1 = arith.extui %0 : i1 to i32
    %c0_i32_0 = arith.constant 0 : i32
    %2 = arith.cmpi ne, %1, %c0_i32_0 : i32
    scf.if %2 {
      %cst_16 = arith.constant 0.000000e+00 : f32
      %19 = vector.broadcast %cst_16 : f32 to vector<16x128xf32>
      %c0_17 = arith.constant 0 : index
      %c0_18 = arith.constant 0 : index
      %20 = vector.load %arg8[%c0_17, %c0_18] : memref<16x128xf32, #tpu.memory_space<vmem>>, vector<16x128xf32>
      tpu.vector_store %arg8[%c0_17, %c0_18], %19 {strides = array<i32>} : memref<16x128xf32, #tpu.memory_space<vmem>>, vector<16x128xf32>,
    } else {
    }
    %c0 = arith.constant 0 : index
    %c0_1 = arith.constant 0 : index
    %3 = vector.load %arg2[%c0, %c0_1] : memref<16x128xf32, #tpu.memory_space<vmem>>, vector<16x128xf32>
    %c0_2 = arith.constant 0 : index
    %c0_3 = arith.constant 0 : index
    %4 = vector.load %arg3[%c0_2, %c0_3] : memref<128x128xf32, #tpu.memory_space<vmem>>, vector<128x128xf32>
    %cst = arith.constant dense<0.000000e+00> : vector<16x128xf32>
    %5 = tpu.matmul %3, %4, %cst {dimension_numbers = #tpu.dot_dimension_numbers<[1], [0], [0], [1], [0, 0, 1, 1], [], []>} : vector<16x128xf32>, vector<128x128xf32>, vector<16x128xf32> -> vector<16x128xf32>
    %c0_4 = arith.constant 0 : index
    %c0_5 = arith.constant 0 : index
    %6 = vector.load %arg4[%c0_4, %c0_5] : memref<1x128xf32, #tpu.memory_space<vmem>>, vector<1x128xf32>
    %7 = vector.broadcast %6 : vector<1x128xf32> to vector<16x128xf32>
    %8 = arith.addf %5, %7 : vector<16x128xf32>
    %cst_6 = arith.constant 0.000000e+00 : f32
    %9 = vector.broadcast %cst_6 : f32 to vector<16x128xf32>
    %10 = arith.maximumf %8, %9 : vector<16x128xf32>
    %c0_7 = arith.constant 0 : index
    %c0_8 = arith.constant 0 : index
    %11 = vector.load %arg8[%c0_7, %c0_8] : memref<16x128xf32, #tpu.memory_space<vmem>>, vector<16x128xf32>
    %c0_9 = arith.constant 0 : index
    %c0_10 = arith.constant 0 : index
    %12 = vector.load %arg5[%c0_9, %c0_10] : memref<128x128xf32, #tpu.memory_space<vmem>>, vector<128x128xf32>
    %cst_11 = arith.constant dense<0.000000e+00> : vector<16x128xf32>
    %13 = tpu.matmul %10, %12, %cst_11 {dimension_numbers = #tpu.dot_dimension_numbers<[1], [0], [0], [1], [0, 0, 1, 1], [], []>} : vector<16x128xf32>, vector<128x128xf32>, vector<16x128xf32> -> vector<16x128xf32>
    %14 = arith.addf %11, %13 : vector<16x128xf32>
    %c0_12 = arith.constant 0 : index
    %c0_13 = arith.constant 0 : index
    %15 = vector.load %arg8[%c0_12, %c0_13] : memref<16x128xf32, #tpu.memory_space<vmem>>, vector<16x128xf32>
    tpu.vector_store %arg8[%c0_12, %c0_13], %14 {strides = array<i32>} : memref<16x128xf32, #tpu.memory_space<vmem>>, vector<16x128xf32>,
    %c0_i32_14 = arith.constant 0 : i32
    %16 = arith.cmpi eq, %arg1, %c0_i32_14 : i32
    %17 = arith.extui %16 : i1 to i32
    %c0_i32_15 = arith.constant 0 : i32
    %18 = arith.cmpi ne, %17, %c0_i32_15 : i32
    scf.if %18 {
      %c0_16 = arith.constant 0 : index
      %c0_17 = arith.constant 0 : index
      %19 = vector.load %arg8[%c0_16, %c0_17] : memref<16x128xf32, #tpu.memory_space<vmem>>, vector<16x128xf32>
      %c0_18 = arith.constant 0 : index
      %c0_19 = arith.constant 0 : index
      %20 = vector.load %arg6[%c0_18, %c0_19] : memref<1x128xf32, #tpu.memory_space<vmem>>, vector<1x128xf32>
      %21 = vector.broadcast %20 : vector<1x128xf32> to vector<16x128xf32>
      %22 = arith.addf %19, %21 : vector<16x128xf32>
      %23 = arith.addf %22, %3 : vector<16x128xf32>
      %c0_20 = arith.constant 0 : index
      %c0_21 = arith.constant 0 : index
      %24 = vector.load %arg7[%c0_20, %c0_21] : memref<16x128xf32, #tpu.memory_space<vmem>>, vector<16x128xf32>
      tpu.vector_store %arg7[%c0_20, %c0_21], %23 {strides = array<i32>} : memref<16x128xf32, #tpu.memory_space<vmem>>, vector<16x128xf32>,
    } else {
    }
    return
  }
  func.func @transform_0(%arg0: i32, %arg1: i32) -> (i32, i32) {
    %c0_i32 = arith.constant 0 : i32
    %c0_i32_0 = arith.constant 0 : i32
    return %arg0, %c0_i32 : i32, i32
  }
  func.func @transform_1(%arg0: i32, %arg1: i32) -> (i32, i32) {
    %c0_i32 = arith.constant 0 : i32
    %c0_i32_0 = arith.constant 0 : i32
    return %c0_i32, %arg1 : i32, i32
  }
  func.func @transform_2(%arg0: i32, %arg1: i32) -> (i32, i32) {
    %c0_i32 = arith.constant 0 : i32
    %c0_i32_0 = arith.constant 0 : i32
    return %c0_i32, %arg1 : i32, i32
  }
  func.func @transform_3(%arg0: i32, %arg1: i32) -> (i32, i32) {
    %c0_i32 = arith.constant 0 : i32
    %c0_i32_0 = arith.constant 0 : i32
    return %arg1, %c0_i32 : i32, i32
  }
  func.func @transform_4(%arg0: i32, %arg1: i32) -> (i32, i32) {
    %c0_i32 = arith.constant 0 : i32
    %c0_i32_0 = arith.constant 0 : i32
    %c0_i32_1 = arith.constant 0 : i32
    return %c0_i32, %c0_i32_0 : i32, i32
  }
  func.func @transform_5(%arg0: i32, %arg1: i32) -> (i32, i32) {
    %c0_i32 = arith.constant 0 : i32
    %c0_i32_0 = arith.constant 0 : i32
    return %arg0, %c0_i32 : i32, i32
  }
}

</mosaic_0001>

<bundles_post_ra>
// kernel: residual_ffn.1
= control target key start
LH: loop header
LB: loop body
LE: loop exit
PB: predicated region body
PF: predicated region fallthrough
CT: control target
= control target key end

     0   :  { %10 = vsyncpa [#allocation4], 0  ;;  %s495_s0 = inlined_call_operand.vmem [shape: f32[16,128], index: 0, kind: input, shape index: {}]   ;;  %s496_s1 = inlined_call_operand.hbm [shape: f32[128,128], index: 1, kind: input, shape index: {}]   ;;  %s497_s2 = inlined_call_operand.vmem [shape: f32[1,128], index: 2, kind: input, shape index: {}]   ;;  %s498_s3 = inlined_call_operand.hbm [shape: f32[128,128], index: 3, kind: input, shape index: {}]   ;;  %s499_s4 = inlined_call_operand.vmem [shape: f32[1,128], index: 4, kind: input, shape index: {}]   ;;  %s500_s5 = inlined_call_operand.vmem [shape: f32[16,128], index: 5, kind: output, shape index: {}]  }
   0x1   :  { %11 = vsyncpa [#allocation6], 0  ;;  %s433_s18 = smov [#allocation3]  }
   0x2   :  { %s19_s19 = sshll.u32 %s433_s18, 4  ;;  %s20_s19 = int_to_ptr.vmem [resolvable:$true] %s19_s19 }
   0x3   :  { %s397_s20 = scalar_lea.vmem %s20_s19, 2048  ;;  %p402_p1 = scmp.lt.s32.totalorder %s20_s19, %s20_s19 }
   0x4   :  { %p398_p0 = scmp.ne.s32.totalorder %s20_s19, %s397_s20  ;;  %p403_p2 = scmp.lt.s32.totalorder %s397_s20, %s397_s20 }
   0x6   :  { %p404_p3 = por %p403_p2, %p402_p1 }
   0x8   :  { %p405_p4 = pnand %p404_p3, %p398_p0 }
   0xa   :  { %408 = shalt.err (!%p405_p4)
}
   0xb   :  { %s434_s21 = smov 128   ;;  %s435_s22 = smov 8  }
   0xc   :  { %25 = dma.hbm_to_vmem [thread:$0]  %s496_s1, 2048, %s20_s19, [#allocation4], %s434_s21, %s434_s21, %s435_s22  }
   0xd   :  { %s436_s25 = smov [#allocation5]  }
   0xe   :  { %s33_s26 = sshll.u32 %s436_s25, 4  ;;  %s34_s26 = int_to_ptr.vmem [resolvable:$true] %s33_s26 }
   0xf   :  { %s417_s27 = scalar_lea.vmem %s34_s26, 2048  ;;  %p422_p6 = scmp.lt.s32.totalorder %s34_s26, %s34_s26 }
  0x10   :  { %p418_p5 = scmp.ne.s32.totalorder %s34_s26, %s417_s27  ;;  %p423_p7 = scmp.lt.s32.totalorder %s417_s27, %s417_s27 }
  0x12   :  { %p424_p8 = por %p423_p7, %p422_p6 }
  0x14   :  { %p425_p9 = pnand %p424_p8, %p418_p5 }
  0x16   :  { %428 = shalt.err (!%p425_p9)
}
  0x17   :  { %39 = dma.hbm_to_vmem [thread:$0]  %s498_s3, 2048, %s34_s26, [#allocation6], %s434_s21, %s434_s21, %s435_s22  }
  0x18   :  { %429 = dma.done.wait [#allocation4], 2048  }
  0x19   :  { %430 = vsyncadd [#allocation4], 4294965248 }
  0x1a   :  { %431 = dma.done.wait [#allocation6], 2048  }
  0x1b   :  { %432 = vsyncadd [#allocation6], 4294965248  ;;  %v71_v0 = vld [vmem:[#allocation3 + $0x78] sm:$0xff]  ;;  %v70_v1 = vld [vmem:[#allocation3 + $0x70] sm:$0xff] }
  0x1c   :  { %315 = vmatprep.subr.mxu0 %v71_v0  ;;  %v69_v2 = vld [vmem:[#allocation3 + $0x68] sm:$0xff]  ;;  %v68_v3 = vld [vmem:[#allocation3 + $0x60] sm:$0xff]  ;;  %v67_v5 = vld [vmem:[#allocation3 + $0x58] sm:$0xff] }
  0x1d   :  { %316 = vmatpush3.msra.mxu0 %v71_v0  ;;  %v476_v4 = vld [vmem:[%s495_s0] sm:$0xff]  ;;  %v173_v6 = vld [vmem:[#allocation5 + $0x78] sm:$0xff]  ;;  %v172_v7 = vld [vmem:[#allocation5 + $0x70] sm:$0xff] }
  0x1e   :  { %317 = vmatprep.subr.mxu0 %v70_v1  ;;  %347 = vmatprep.mubr.f32.mxu0 %v476_v4  ;;  %v66_v8 = vld [vmem:[#allocation3 + $0x50] sm:$0xff]  ;;  %v171_v9 = vld [vmem:[#allocation5 + $0x68] sm:$0xff]  ;;  %v170_v11 = vld [vmem:[#allocation5 + $0x60] sm:$0xff] }
  0x1f   :  { %318 = vmatpush3.msra.mxu0 %v70_v1  ;;  %350 = vmatprep.subr.mxu1 %v173_v6  ;;  %v65_v10 = vld [vmem:[#allocation3 + $0x48] sm:$0xff]  ;;  %v64_v12 = vld [vmem:[#allocation3 + $0x40] sm:$0xff]  ;;  %v169_v13 = vld [vmem:[#allocation5 + $0x58] sm:$0xff] }
  0x20   :  { %319 = vmatprep.subr.mxu0 %v69_v2  ;;  %351 = vmatpush3.msra.mxu1 %v173_v6  ;;  %v63_v14 = vld [vmem:[#allocation3 + $0x38] sm:$0xff]  ;;  %v168_v15 = vld [vmem:[#allocation5 + $0x50] sm:$0xff]  ;;  %v167_v17 = vld [vmem:[#allocation5 + $0x48] sm:$0xff] }
  0x21   :  { %320 = vmatpush3.msra.mxu0 %v69_v2  ;;  %352 = vmatprep.subr.mxu1 %v172_v7  ;;  %v62_v16 = vld [vmem:[#allocation3 + $0x30] sm:$0xff]  ;;  %v61_v18 = vld [vmem:[#allocation3 + $0x28] sm:$0xff]  ;;  %v166_v19 = vld [vmem:[#allocation5 + $0x40] sm:$0xff] }
  0x22   :  { %321 = vmatprep.subr.mxu0 %v68_v3  ;;  %353 = vmatpush3.msra.mxu1 %v172_v7  ;;  %v60_v20 = vld [vmem:[#allocation3 + $0x20] sm:$0xff]  ;;  %v165_v21 = vld [vmem:[#allocation5 + $0x38] sm:$0xff]  ;;  %v164_v23 = vld [vmem:[#allocation5 + $0x30] sm:$0xff] }
  0x23   :  { %322 = vmatpush3.msra.mxu0 %v68_v3  ;;  %354 = vmatprep.subr.mxu1 %v171_v9  ;;  %v59_v22 = vld [vmem:[#allocation3 + $0x18] sm:$0xff]  ;;  %v58_v24 = vld [vmem:[#allocation3 + $0x10] sm:$0xff]  ;;  %v163_v25 = vld [vmem:[#allocation5 + $0x28] sm:$0xff] }
  0x24   :  { %323 = vmatprep.subr.mxu0 %v67_v5  ;;  %355 = vmatpush3.msra.mxu1 %v171_v9  ;;  %v57_v26 = vld [vmem:[#allocation3 + $0x8] sm:$0xff]  ;;  %v162_v27 = vld [vmem:[#allocation5 + $0x20] sm:$0xff]  ;;  %v161_v30 = vld [vmem:[#allocation5 + $0x18] sm:$0xff] }
  0x25   :  { %324 = vmatpush3.msra.mxu0 %v67_v5  ;;  %356 = vmatprep.subr.mxu1 %v170_v11  ;;  %v56_v28 = vld [vmem:[#allocation3] sm:$0xff]  ;;  %v55_v29 = vld [vmem:[%s495_s0 + $0x8] sm:$0xff]  ;;  %v160_v31 = vld [vmem:[#allocation5 + $0x10] sm:$0xff] }
  0x26   :  { %325 = vmatprep.subr.mxu0 %v66_v8  ;;  %357 = vmatpush3.msra.mxu1 %v170_v11  ;;  %v159_v32 = vld [vmem:[#allocation5 + $0x8] sm:$0xff]  ;;  %v158_v33 = vld [vmem:[#allocation5] sm:$0xff] }
  0x27   :  { %326 = vmatpush3.msra.mxu0 %v66_v8  ;;  %358 = vmatprep.subr.mxu1 %v169_v13  ;;  %v277_v34 = vld [vmem:[%s497_s2] ss:$0 sm:$0xff] }
  0x28   :  { %327 = vmatprep.subr.mxu0 %v65_v10  ;;  %359 = vmatpush3.msra.mxu1 %v169_v13  ;;  %v278_v41 = vld [vmem:[%s499_s4] ss:$0 sm:$0xff] }
  0x29   :  { %328 = vmatpush3.msra.mxu0 %v65_v10  ;;  %360 = vmatprep.subr.mxu1 %v168_v15 }
  0x2a   :  { %329 = vmatprep.subr.mxu0 %v64_v12  ;;  %361 = vmatpush3.msra.mxu1 %v168_v15 }
  0x2b   :  { %330 = vmatpush3.msra.mxu0 %v64_v12  ;;  %362 = vmatprep.subr.mxu1 %v167_v17 }
  0x2c   :  { %331 = vmatprep.subr.mxu0 %v63_v14  ;;  %363 = vmatpush3.msra.mxu1 %v167_v17 }
  0x2d   :  { %332 = vmatpush3.msra.mxu0 %v63_v14  ;;  %364 = vmatprep.subr.mxu1 %v166_v19 }
  0x2e   :  { %333 = vmatprep.subr.mxu0 %v62_v16  ;;  %365 = vmatpush3.msra.mxu1 %v166_v19 }
  0x2f   :  { %334 = vmatpush3.msra.mxu0 %v62_v16  ;;  %366 = vmatprep.subr.mxu1 %v165_v21 }
  0x30   :  { %335 = vmatprep.subr.mxu0 %v61_v18  ;;  %367 = vmatpush3.msra.mxu1 %v165_v21 }
  0x31   :  { %336 = vmatpush3.msra.mxu0 %v61_v18  ;;  %368 = vmatprep.subr.mxu1 %v164_v23 }
  0x32   :  { %337 = vmatprep.subr.mxu0 %v60_v20  ;;  %369 = vmatpush3.msra.mxu1 %v164_v23 }
  0x33   :  { %338 = vmatpush3.msra.mxu0 %v60_v20  ;;  %370 = vmatprep.subr.mxu1 %v163_v25 }
  0x34   :  { %339 = vmatprep.subr.mxu0 %v59_v22  ;;  %371 = vmatpush3.msra.mxu1 %v163_v25 }
  0x35   :  { %340 = vmatpush3.msra.mxu0 %v59_v22  ;;  %372 = vmatprep.subr.mxu1 %v162_v27 }
  0x36   :  { %341 = vmatprep.subr.mxu0 %v58_v24  ;;  %373 = vmatpush3.msra.mxu1 %v162_v27 }
  0x37   :  { %342 = vmatpush3.msra.mxu0 %v58_v24  ;;  %374 = vmatprep.subr.mxu1 %v161_v30 }
  0x38   :  { %343 = vmatprep.subr.mxu0 %v57_v26  ;;  %375 = vmatpush3.msra.mxu1 %v161_v30 }
  0x39   :  { %344 = vmatpush3.msra.mxu0 %v57_v26  ;;  %376 = vmatprep.subr.mxu1 %v160_v31 }
  0x3a   :  { %345 = vmatprep.subr.mxu0 %v56_v28  ;;  %377 = vmatpush3.msra.mxu1 %v160_v31 }
  0x3b   :  { %346 = vmatpush3.msra.mxu0 %v56_v28  ;;  %378 = vmatprep.subr.mxu1 %v159_v32 }
  0x3c   :  { %348 = vmatmul.mubr.f32.vlgmr.msra.gmra.mxu0 %v55_v29  ;;  %379 = vmatpush3.msra.mxu1 %v159_v32 }
  0x3d   :  { %380 = vmatprep.subr.mxu1 %v158_v33 }
  0x3e   :  { %381 = vmatpush3.msra.mxu1 %v158_v33 }
  0xfc   :  { %v349_v35 = vpop.f32.mrf.mxu0 }
  0xfd   :  { %v151_v36 = vadd.f32 %v349_v35, %v277_v34 }
  0xfe   :  { %v145_v37 = vpop.f32.mrf.mxu0 }
  0xff   :  { %v146_v38 = vadd.f32 %v277_v34, %v145_v37  ;;  %v155_v40 = vmax.f32 %v151_v36, 0.0 }
 0x101   :  { %v154_v39 = vmax.f32 %v146_v38, 0.0 }
 0x103   :  { %382 = vmatprep.mubr.f32.mxu1 %v154_v39 }
 0x104   :  { %383 = vmatmul.mubr.f32.vlgmr.msra.gmra.mxu1 %v155_v40 }
 0x1c4   :  { %v384_v42 = vpop.f32.mrf.mxu1 }
 0x1c5   :  { %v266_v43 = vadd.f32 %v384_v42, %v278_v41 }
 0x1c6   :  { %v240_v44 = vpop.f32.mrf.mxu1 }
 0x1c7   :  { %v268_v45 = vadd.f32 %v266_v43, %v55_v29  ;;  %v265_v46 = vadd.f32 %v278_v41, %v240_v44 }
 0x1c9   :  { %270 = vst [vmem:[%s500_s5 + $0x8] sm:$0xff] %v268_v45  ;;  %v267_v47 = vadd.f32 %v265_v46, %v476_v4 }
 0x1cb   :  { %269 = vst [vmem:[%s500_s5] sm:$0xff] %v267_v47 }
 0x1cc   :  { %275 = vsyncpa [#allocation4], 1 }
 0x1cd   :  { %276 = vsyncpa [#allocation6], 1 }

</bundles_post_ra>
